<compile_context>
chip_gen: v6e
topology: v6e:2x2x1
jax: 0.10.0
libtpu: 0.0.40
codegen_flags: <defaults>
</compile_context>

<pallas_src>
import math
from functools import partial

import numpy as np
import jax
import jax.numpy as jnp
from jax.experimental import pallas as pl
from jax.experimental.pallas import tpu as pltpu


# ----------------------------- helpers --------------------------------------

_BF16 = jnp.bfloat16
_VMEM_LIMIT = 48 * 1024 * 1024          # safe on v5e/v6e (128 MiB) and v7x (64 MiB)
_FFN_BUDGET = 36 * 1024 * 1024          # double-buffered footprint budget for FFN


def _gelu_tanh(x):
    return 0.5 * x * (1.0 + jnp.tanh(math.sqrt(2.0 / math.pi)
                                     * (x + 0.044715 * x * x * x)))


_ACTS = {
    "gelu_pytorch_tanh": _gelu_tanh,
    "relu": lambda x: jnp.maximum(x, 0.0),
    "gelu_new": _gelu_tanh,
}


def _pick_tile(dim, target, align):
    """Largest `align`-aligned divisor of `dim` that is <= target, else full dim."""
    if dim <= target:
        return dim
    for t in range(target, align - 1, -1):
        if dim % t == 0 and t % align == 0:
            return t
    return dim


def _ffn_tiles(M, D, F, n_weights):
    """Pick (tm, tf) so the double-buffered FFN footprint stays under budget."""
    tm = _pick_tile(M, 512, 8)
    tf = _pick_tile(F, 512, 128)

    def footprint(tm_, tf_):
        x_b = tm_ * D * 4                 # f32 input rows
        w_b = n_weights * D * tf_ * 2     # bf16 weight tiles
        o_b = tm_ * D * 4                 # f32 resident output/accumulator
        h_b = tm_ * D * 2                 # bf16 normalized-activation scratch
        return 2 * (x_b + w_b + o_b) + h_b

    while footprint(tm, tf) > _FFN_BUDGET:
        new_tm = _pick_tile(M, max(tm // 2, 8), 8)
        if new_tm == tm:
            break
        tm = new_tm
    while footprint(tm, tf) > _FFN_BUDGET:
        new_tf = _pick_tile(F, max(tf // 2, 128), 128)
        if new_tf == tf:
            break
        tf = new_tf
    return tm, tf


# ----------------------------- Pallas kernels -------------------------------

def _rmsnorm_kernel(x_ref, g_ref, o_ref, *, eps):
    x = x_ref[...]                                       # (tm, D) f32
    var = jnp.mean(x * x, axis=-1, keepdims=True)
    o_ref[...] = (g_ref[...] * (x * jax.lax.rsqrt(var + eps))).astype(o_ref.dtype)


def rmsnorm(x, g, eps=1e-6):
    M, D = x.shape
    tm = _pick_tile(M, 512, 8)
    return pl.pallas_call(
        partial(_rmsnorm_kernel, eps=eps),
        out_shape=jax.ShapeDtypeStruct((M, D), x.dtype),
        grid=(M // tm,),
        in_specs=[pl.BlockSpec((tm, D), lambda i: (i, 0)),
                  pl.BlockSpec((1, D), lambda i: (0, 0))],
        out_specs=pl.BlockSpec((tm, D), lambda i: (i, 0)),
        compiler_params=pltpu.CompilerParams(
            dimension_semantics=("parallel",),
            vmem_limit_bytes=_VMEM_LIMIT),
    )(x, g.reshape(1, D))


def _ln_matmul_kernel(x_ref, g_ref, w_ref, o_ref, *, eps):
    # fused: rmsnorm(x) @ W   (W already bf16; rmsnorm kept in f32)
    x = x_ref[...]                                       # (tm, D) f32
    var = jnp.mean(x * x, axis=-1, keepdims=True)
    h = ((x * jax.lax.rsqrt(var + eps)) * g_ref[...]).astype(_BF16)
    o_ref[...] = jnp.dot(h, w_ref[...],
                         preferred_element_type=jnp.float32).astype(o_ref.dtype)


def ln_matmul(x, g, w, out_dtype=None, eps=1e-6):
    M, D = x.shape
    _, N = w.shape
    tm = _pick_tile(M, 512, 8)
    tn = _pick_tile(N, 512, 128)
    return pl.pallas_call(
        partial(_ln_matmul_kernel, eps=eps),
        out_shape=jax.ShapeDtypeStruct((M, N), out_dtype or x.dtype),
        grid=(M // tm, N // tn),
        in_specs=[pl.BlockSpec((tm, D), lambda i, j: (i, 0)),
                  pl.BlockSpec((1, D), lambda i, j: (0, 0)),
                  pl.BlockSpec((D, tn), lambda i, j: (0, j))],
        out_specs=pl.BlockSpec((tm, tn), lambda i, j: (i, j)),
        compiler_params=pltpu.CompilerParams(
            dimension_semantics=("parallel", "parallel"),
            vmem_limit_bytes=_VMEM_LIMIT),
    )(x, g.reshape(1, D), w.astype(_BF16))


def _matmul_kernel(a_ref, b_ref, o_ref):
    # f32 output block is resident across the K axis -> accumulate in place.
    @pl.when(pl.program_id(2) == 0)
    def _():
        o_ref[...] = jnp.zeros_like(o_ref)
    o_ref[...] += jnp.dot(a_ref[...].astype(_BF16), b_ref[...],
                          preferred_element_type=jnp.float32)


def matmul(a, b):
    """bf16 x bf16 -> f32 GEMM (A expected bf16; B pre-cast bf16)."""
    M, K = a.shape
    K2, N = b.shape
    assert K == K2
    tm = _pick_tile(M, 512, 8)
    tn = _pick_tile(N, 512, 128)
    tk = _pick_tile(K, 512, 128)
    return pl.pallas_call(
        _matmul_kernel,
        out_shape=jax.ShapeDtypeStruct((M, N), jnp.float32),
        grid=(M // tm, N // tn, K // tk),
        in_specs=[pl.BlockSpec((tm, tk), lambda i, j, k: (i, k)),
                  pl.BlockSpec((tk, tn), lambda i, j, k: (k, j))],
        out_specs=pl.BlockSpec((tm, tn), lambda i, j, k: (i, j)),
        compiler_params=pltpu.CompilerParams(
            dimension_semantics=("parallel", "parallel", "arbitrary"),
            vmem_limit_bytes=_VMEM_LIMIT),
    )(a, b.astype(_BF16))


def _flash_attn_kernel(*args, scale, has_bias, has_mask):
    refs = list(args)
    q_ref, k_ref, v_ref = refs[0], refs[1], refs[2]
    pos = 3
    bias_ref = None
    mask_ref = None
    if has_bias:
        bias_ref = refs[pos]
        pos += 1
    if has_mask:
        mask_ref = refs[pos]
        pos += 1
    o_ref, m_sc, l_sc, acc_sc = refs[pos], refs[pos + 1], refs[pos + 2], refs[pos + 3]

    ki = pl.program_id(3)

    @pl.when(ki == 0)
    def _():
        m_sc[...] = jnp.full_like(m_sc, -jnp.inf)
        l_sc[...] = jnp.zeros_like(l_sc)
        acc_sc[...] = jnp.zeros_like(acc_sc)

    q = q_ref[0, 0]                                      # (tq, Dh) bf16
    if scale != 1.0:                                     # fold scale into q (static)
        q = q * scale
    q = q.astype(_BF16)
    k = k_ref[0, 0].astype(_BF16)                        # (tk, Dh)
    v = v_ref[0, 0].astype(_BF16)                        # (tk, Dh)

    s = jax.lax.dot_general(q, k, (((1,), (1,)), ((), ())),
                            preferred_element_type=jnp.float32)   # (tq, tk) f32
    if bias_ref is not None:
        s = s + bias_ref[0]                              # bf16 bias, promotes to f32
    if mask_ref is not None:
        s = s + mask_ref[0]                              # (1, tk) f32, broadcasts over tq

    m_prev = m_sc[...]
    m_new = jnp.maximum(m_prev, jnp.max(s, axis=-1, keepdims=True))
    alpha = jnp.exp(m_prev - m_new)
    p = jnp.exp(s - m_new)                               # f32 (tq, tk)
    l_sc[...] = alpha * l_sc[...] + jnp.sum(p, axis=-1, keepdims=True)
    acc_sc[...] = alpha * acc_sc[...] + jnp.dot(p.astype(_BF16), v,
                                                preferred_element_type=jnp.float32)
    m_sc[...] = m_new

    @pl.when(ki == pl.num_programs(3) - 1)
    def _():
        inv_l = pl.reciprocal(l_sc[...], approx=True)    # EUP slot, (tq,1) only
        o_ref[0, 0] = (acc_sc[...] * inv_l).astype(o_ref.dtype)


def attention(q, k, v, bias, mask, scale):
    # q,k,v: (B, H, S, Dh) bf16; bias: (H, S, S) bf16 or None; mask: (B, 1, S) f32 or None
    B, H, S, Dh = q.shape
    tq = _pick_tile(S, 256, 8)
    tk = _pick_tile(S, 512, 128)
    has_bias = bias is not None
    has_mask = mask is not None

    in_specs = [
        pl.BlockSpec((1, 1, tq, Dh), lambda b, h, qi, ki: (b, h, qi, 0)),
        pl.BlockSpec((1, 1, tk, Dh), lambda b, h, qi, ki: (b, h, ki, 0)),
        pl.BlockSpec((1, 1, tk, Dh), lambda b, h, qi, ki: (b, h, ki, 0)),
    ]
    inputs = [q, k, v]
    if has_bias:
        in_specs.append(pl.BlockSpec((1, tq, tk), lambda b, h, qi, ki: (h, qi, ki)))
        inputs.append(bias)
    if has_mask:
        in_specs.append(pl.BlockSpec((1, 1, tk), lambda b, h, qi, ki: (b, 0, ki)))
        inputs.append(mask)

    return pl.pallas_call(
        partial(_flash_attn_kernel, scale=scale, has_bias=has_bias, has_mask=has_mask),
        out_shape=jax.ShapeDtypeStruct((B, H, S, Dh), _BF16),
        grid=(B, H, S // tq, S // tk),
        in_specs=in_specs,
        out_specs=pl.BlockSpec((1, 1, tq, Dh), lambda b, h, qi, ki: (b, h, qi, 0)),
        scratch_shapes=[pltpu.VMEM((tq, 1), jnp.float32),
                        pltpu.VMEM((tq, 1), jnp.float32),
                        pltpu.VMEM((tq, Dh), jnp.float32)],
        compiler_params=pltpu.CompilerParams(
            dimension_semantics=("parallel", "parallel", "parallel", "arbitrary"),
            vmem_limit_bytes=_VMEM_LIMIT),
    )(*inputs)


def _ffn_gated_kernel(x_ref, g_ref, w0_ref, w1_ref, wo_ref, o_ref, h_ref,
                      *, eps, act):
    fi = pl.program_id(1)

    @pl.when(fi == 0)
    def _():
        # RMSNorm hoisted out of the d_ff reduction loop; normalized bf16
        # activations cached in VMEM and reused for every f tile.
        x = x_ref[...]                                   # (tm, D) f32
        var = jnp.mean(x * x, axis=-1, keepdims=True)
        h_ref[...] = ((x * jax.lax.rsqrt(var + eps)) * g_ref[...]).astype(_BF16)
        o_ref[...] = jnp.zeros_like(o_ref)               # resident f32 accumulator

    h = h_ref[...]                                       # (tm, D) bf16
    h0 = jnp.dot(h, w0_ref[...], preferred_element_type=jnp.float32)
    h1 = jnp.dot(h, w1_ref[...], preferred_element_type=jnp.float32)
    gated = (act(h0) * h1).astype(_BF16)
    o_ref[...] += jnp.dot(gated, wo_ref[...], preferred_element_type=jnp.float32)


def ffn_gated(x, g, w0t, w1t, wot, act_name, eps=1e-6):
    # fused: rmsnorm -> (act(x@W0) * (x@W1)) @ Wo, tiled over (M rows, F reduction)
    M, D = x.shape
    F = w0t.shape[1]
    tm, tf = _ffn_tiles(M, D, F, n_weights=3)
    return pl.pallas_call(
        partial(_ffn_gated_kernel, eps=eps, act=_ACTS[act_name]),
        out_shape=jax.ShapeDtypeStruct((M, D), jnp.float32),
        grid=(M // tm, F // tf),
        in_specs=[pl.BlockSpec((tm, D), lambda i, f: (i, 0)),
                  pl.BlockSpec((1, D), lambda i, f: (0, 0)),
                  pl.BlockSpec((D, tf), lambda i, f: (0, f)),
                  pl.BlockSpec((D, tf), lambda i, f: (0, f)),
                  pl.BlockSpec((tf, D), lambda i, f: (f, 0))],
        out_specs=pl.BlockSpec((tm, D), lambda i, f: (i, 0)),
        scratch_shapes=[pltpu.VMEM((tm, D), _BF16)],
        compiler_params=pltpu.CompilerParams(
            dimension_semantics=("parallel", "arbitrary"),
            vmem_limit_bytes=_VMEM_LIMIT),
    )(x, g.reshape(1, D), w0t.astype(_BF16), w1t.astype(_BF16), wot.astype(_BF16))


def _ffn_kernel(x_ref, g_ref, wi_ref, wo_ref, o_ref, h_ref, *, eps, act):
    fi = pl.program_id(1)

    @pl.when(fi == 0)
    def _():
        x = x_ref[...]
        var = jnp.mean(x * x, axis=-1, keepdims=True)
        h_ref[...] = ((x * jax.lax.rsqrt(var + eps)) * g_ref[...]).astype(_BF16)
        o_ref[...] = jnp.zeros_like(o_ref)

    h = h_ref[...]
    hi = act(jnp.dot(h, wi_ref[...], preferred_element_type=jnp.float32)).astype(_BF16)
    o_ref[...] += jnp.dot(hi, wo_ref[...], preferred_element_type=jnp.float32)


def ffn(x, g, wit, wot, act_name, eps=1e-6):
    M, D = x.shape
    F = wit.shape[1]
    tm, tf = _ffn_tiles(M, D, F, n_weights=2)
    return pl.pallas_call(
        partial(_ffn_kernel, eps=eps, act=_ACTS[act_name]),
        out_shape=jax.ShapeDtypeStruct((M, D), jnp.float32),
        grid=(M // tm, F // tf),
        in_specs=[pl.BlockSpec((tm, D), lambda i, f: (i, 0)),
                  pl.BlockSpec((1, D), lambda i, f: (0, 0)),
                  pl.BlockSpec((D, tf), lambda i, f: (0, f)),
                  pl.BlockSpec((tf, D), lambda i, f: (f, 0))],
        out_specs=pl.BlockSpec((tm, D), lambda i, f: (i, 0)),
        scratch_shapes=[pltpu.VMEM((tm, D), _BF16)],
        compiler_params=pltpu.CompilerParams(
            dimension_semantics=("parallel", "arbitrary"),
            vmem_limit_bytes=_VMEM_LIMIT),
    )(x, g.reshape(1, D), wit.astype(_BF16), wot.astype(_BF16))


# ------------------- pure-JAX reference ops (mirror bf16 casts) --------------

def _rms_ref(x, g, eps=1e-6):
    var = jnp.mean(x * x, axis=-1, keepdims=True)
    return g.reshape(1, -1) * (x * jax.lax.rsqrt(var + eps))


def _ln_matmul_ref(x, g, w, out_dtype=None, eps=1e-6):
    h = _rms_ref(x, g, eps).astype(_BF16)
    out = jnp.dot(h, w.astype(_BF16), preferred_element_type=jnp.float32)
    return out.astype(out_dtype or x.dtype)


def _mm_ref(a, b):
    return jnp.dot(a.astype(_BF16), b.astype(_BF16),
                   preferred_element_type=jnp.float32)


def _attn_ref(q, k, v, bias, mask, scale):
    if scale != 1.0:
        q = q * scale
    s = jnp.einsum("bhqd,bhkd->bhqk", q, k, preferred_element_type=jnp.float32)
    if bias is not None:
        s = s + bias[None].astype(jnp.float32)
    if mask is not None:
        s = s + mask[:, None]                            # (B,1,1,S)
    m = jnp.max(s, axis=-1, keepdims=True)
    p = jnp.exp(s - m)
    out = jnp.einsum("bhqk,bhkd->bhqd", p.astype(_BF16), v,
                     preferred_element_type=jnp.float32)
    return (out / jnp.sum(p, axis=-1, keepdims=True)).astype(_BF16)


def _ffn_gated_ref(x, g, w0t, w1t, wot, act_name, eps=1e-6):
    h = _rms_ref(x, g, eps).astype(_BF16)
    h0 = jnp.dot(h, w0t.astype(_BF16), preferred_element_type=jnp.float32)
    h1 = jnp.dot(h, w1t.astype(_BF16), preferred_element_type=jnp.float32)
    gg = (_ACTS[act_name](h0) * h1).astype(_BF16)
    return jnp.dot(gg, wot.astype(_BF16), preferred_element_type=jnp.float32)


def _ffn_ref(x, g, wit, wot, act_name, eps=1e-6):
    h = _rms_ref(x, g, eps).astype(_BF16)
    hi = _ACTS[act_name](jnp.dot(h, wit.astype(_BF16),
                                 preferred_element_type=jnp.float32)).astype(_BF16)
    return jnp.dot(hi, wot.astype(_BF16), preferred_element_type=jnp.float32)


PALLAS_OPS = dict(rmsnorm=rmsnorm, ln_matmul=ln_matmul, matmul=matmul,
                  attention=attention, ffn_gated=ffn_gated, ffn=ffn)
REF_OPS = dict(rmsnorm=_rms_ref, ln_matmul=_ln_matmul_ref, matmul=_mm_ref,
               attention=_attn_ref, ffn_gated=_ffn_gated_ref, ffn=_ffn_ref)


# ----------------------------- model glue -----------------------------------

def _relative_position_bucket(relative_position, num_buckets=32, max_distance=128):
    # bidirectional=True branch of T5Attention._relative_position_bucket
    num_buckets //= 2
    rel_buckets = (relative_position > 0).astype(jnp.int32) * num_buckets
    rel_abs = jnp.abs(relative_position)
    max_exact = num_buckets // 2
    is_small = rel_abs < max_exact
    rel_safe = jnp.maximum(rel_abs, 1)                    # avoid log(0)
    rel_if_large = max_exact + (
        jnp.log(rel_safe.astype(jnp.float32) / max_exact)
        / math.log(max_distance / max_exact)
        * (num_buckets - max_exact)
    ).astype(jnp.int32)
    rel_if_large = jnp.minimum(rel_if_large, num_buckets - 1)
    rel_buckets = rel_buckets + jnp.where(is_small, rel_abs, rel_if_large)
    return rel_buckets


def compute_bias(rel_emb, q_len, k_len):
    ctx = jnp.arange(q_len, dtype=jnp.int32)[:, None]
    mem = jnp.arange(k_len, dtype=jnp.int32)[None, :]
    buckets = _relative_position_bucket(mem - ctx)        # (q, k)
    values = rel_emb[buckets]                             # (q, k, H)  glue gather
    # streamed in bf16: halves the bias DMA in the flash-attention kernel
    return jnp.transpose(values, (2, 0, 1)).astype(_BF16)  # (H, q, k)


def init_params(key, config):
    D = config["d_model"]
    F = config["d_ff"]
    H = config["num_heads"]
    inner = D                       # T5Stack passes inner_dim = model_dim
    L = config["num_layers"]
    V = config["vocab_size"]
    relative_attention = config["model_type"] != "umt5"

    keys = iter(jax.random.split(key, 64))

    def nrm(shape, scale=0.02):
        return (scale * jax.random.normal(next(keys), shape)).astype(jnp.float32)

    params = {
        "embedding": nrm((V, D), 1.0),
        "final_ln": jnp.ones((D,), jnp.float32),
        "layers": [],
    }
    for i in range(L):
        lyr = {
            "ln1": jnp.ones((D,), jnp.float32),
            "q": nrm((inner, D)), "k": nrm((inner, D)),
            "v": nrm((inner, D)), "o": nrm((D, inner)),
            "ln2": jnp.ones((D,), jnp.float32),
        }
        if config["is_gated_act"]:
            lyr.update(wi0=nrm((F, D)), wi1=nrm((F, D)), wo=nrm((D, F)))
        else:
            lyr.update(wi=nrm((F, D)), wo=nrm((D, F)))
        if (not relative_attention) or i == 0:
            lyr["rel_bias"] = nrm((32, H), 0.5)   # relative_attention_num_buckets = 32
        params["layers"].append(lyr)
    return params


def prepare_params(params):
    """One-time weight preprocessing: concat QKV, transpose, cast to bf16.

    Avoids per-layer per-call transpose/concat/cast HBM passes in the forward.
    """
    proc = {
        "embedding": params["embedding"],
        "final_ln": params["final_ln"],
        "layers": [],
    }
    for lyr in params["layers"]:
        p = {
            "ln1": lyr["ln1"],
            "ln2": lyr["ln2"],
            "wqkv": jnp.concatenate([lyr["q"].T, lyr["k"].T, lyr["v"].T],
                                    axis=1).astype(_BF16),        # (D, 3*inner)
            "wo_attn": lyr["o"].T.astype(_BF16),                  # (inner, D)
            "wo_t": lyr["wo"].T.astype(_BF16),                    # (F, D)
        }
        if "wi0" in lyr:
            p["wi0_t"] = lyr["wi0"].T.astype(_BF16)               # (D, F)
            p["wi1_t"] = lyr["wi1"].T.astype(_BF16)
        else:
            p["wi_t"] = lyr["wi"].T.astype(_BF16)
        if "rel_bias" in lyr:
            p["rel_bias"] = lyr["rel_bias"]
        proc["layers"].append(p)
    return proc


def t5_forward(params, input_ids, config, ops, attention_mask=None):
    D = config["d_model"]
    H = config["num_heads"]
    B, S = input_ids.shape

    x = params["embedding"][input_ids]                    # (B, S, D)  glue gather
    x = jnp.nan_to_num(x)

    mask = None
    if attention_mask is not None:
        # additive mask kept in its compact (B, 1, S) form (broadcast in-kernel)
        m = 1.0 - attention_mask.astype(jnp.float32).reshape(B, 1, S)
        mask = jnp.where(m != 0, -jnp.finfo(jnp.float32).max, 0.0)   # (B, 1, S)

    past_bias = None
    for lyr in params["layers"]:
        inner = lyr["wqkv"].shape[1] // 3
        Dh = inner // H

        # ---------------- self-attention sub-layer ----------------
        # fused rmsnorm + concatenated QKV projection (bf16 out for the MXU)
        qkv = ops["ln_matmul"](x.reshape(B * S, D), lyr["ln1"], lyr["wqkv"],
                               out_dtype=_BF16)                        # (B*S, 3*inner)
        qkv = qkv.reshape(B, S, 3, H, Dh).transpose(2, 0, 3, 1, 4)     # (3, B, H, S, Dh)
        q, k, v = qkv[0], qkv[1], qkv[2]

        if "rel_bias" in lyr:
            past_bias = compute_bias(lyr["rel_bias"], S, S)            # (H, S, S) bf16

        # T5 pre-scales K by sqrt(inner/H); attention core uses 1/sqrt(Dh).
        # Folded into one constant; == 1.0 for inner == H*Dh (multiply skipped).
        scale = math.sqrt(inner / H) / math.sqrt(Dh)

        attn = ops["attention"](q, k, v, past_bias, mask, scale)       # (B, H, S, Dh) bf16
        attn = attn.transpose(0, 2, 1, 3).reshape(B * S, inner)
        out = ops["matmul"](attn, lyr["wo_attn"])                      # (B*S, D) f32
        x = x + out.reshape(B, S, D)

        # ---------------- feed-forward sub-layer (rmsnorm fused) ----------------
        if "wi0_t" in lyr:
            ff = ops["ffn_gated"](x.reshape(B * S, D), lyr["ln2"],
                                  lyr["wi0_t"], lyr["wi1_t"], lyr["wo_t"],
                                  config["dense_act_fn"])
        else:
            ff = ops["ffn"](x.reshape(B * S, D), lyr["ln2"],
                            lyr["wi_t"], lyr["wo_t"], config["dense_act_fn"])
        x = x + ff.reshape(B, S, D)

    x = ops["rmsnorm"](x.reshape(B * S, D), params["final_ln"]).reshape(B, S, D)
    # TODO(synk): final_projection (Linear->ReLU->Dropout->Linear) only exists for
    # project_in_dim in {512,768,1024,2048} with project_out_dim==4096; not
    # instantiated by this config, so it is omitted here.
    return x


# ----------------------------- main ------------------------------------------

if __name__ == "__main__":
    def run_case(config, B, S, use_mask, seed):
        key = jax.random.PRNGKey(0)
        key = jax.random.fold_in(key, seed)
        pkey, ikey = jax.random.split(key)
        raw = init_params(pkey, config)
        params = prepare_params(raw)
        input_ids = jax.random.randint(ikey, (B, S), 0, config["vocab_size"],
                                       dtype=jnp.int32)
        attention_mask = None
        if use_mask:
            attention_mask = jnp.ones((B, S), jnp.int32).at[1, S - 2:].set(0)

        out = t5_forward(params, input_ids, config, PALLAS_OPS, attention_mask)
        out = jax.block_until_ready(out)
        ref = t5_forward(params, input_ids, config, REF_OPS, attention_mask)
        np.testing.assert_allclose(np.asarray(out), np.asarray(ref),
                                   rtol=5e-3, atol=5e-3)

    # T5-v1.1 style: gated GELU FFN, relative bias in layer 0, padded batch.
    config_gated = dict(
        num_layers=2, d_model=32, d_ff=64, num_heads=4, vocab_size=64,
        dense_act_fn="gelu_pytorch_tanh", is_gated_act=True, model_type="t5")
    run_case(config_gated, B=2, S=8, use_mask=True, seed=0)

    # umT5 style: plain ReLU FFN, per-layer relative bias, no attention mask.
    config_plain = dict(
        num_layers=2, d_model=32, d_ff=64, num_heads=4, vocab_size=64,
        dense_act_fn="relu", is_gated_act=False, model_type="umt5")
    run_case(config_plain, B=2, S=8, use_mask=False, seed=1)

    print("KERNEL_OK")
</pallas_src>

<mosaic_0001>
module attributes {stable_mosaic.version = 11 : i64} {
  func.func @_ln_matmul_kernel(%arg0: i32, %arg1: i32, %arg2: memref<16x32xf32, #tpu.memory_space<vmem>>, %arg3: memref<1x32xf32, #tpu.memory_space<vmem>>, %arg4: memref<32x96xbf16, #tpu.memory_space<vmem>>, %arg5: memref<16x96xbf16, #tpu.memory_space<vmem>>) attributes {dimension_semantics = [#tpu.dimension_semantics<parallel>, #tpu.dimension_semantics<parallel>], iteration_bounds = array<i64: 1, 1>, scalar_prefetch = 0 : i64, scratch_operands = 0 : i64, tpu.core_type = #tpu.core_type<tc>, window_params = [{transform_indices = @transform_0, window_bounds = array<i64: 16, 32>}, {pipeline_mode = #tpu.pipeline_mode<synchronous>, transform_indices = @transform_1, window_bounds = array<i64: 1, 32>}, {transform_indices = @transform_2, window_bounds = array<i64: 32, 96>}, {transform_indices = @transform_3, window_bounds = array<i64: 16, 96>}]} {
    %c0 = arith.constant 0 : index
    %c0_0 = arith.constant 0 : index
    %0 = vector.load %arg2[%c0, %c0_0] : memref<16x32xf32, #tpu.memory_space<vmem>>, vector<16x32xf32>
    %1 = arith.mulf %0, %0 : vector<16x32xf32>
    %cst = arith.constant dense<0.000000e+00> : vector<16xf32>
    %2 = vector.multi_reduction <add>, %1, %cst [1] : vector<16x32xf32> to vector<16xf32>
    %3 = vector.shape_cast %2 : vector<16xf32> to vector<16x1xf32>
    %cst_1 = arith.constant 3.200000e+01 : f32
    %4 = vector.broadcast %cst_1 : f32 to vector<16x1xf32>
    %5 = arith.divf %3, %4 : vector<16x1xf32>
    %cst_2 = arith.constant 9.99999997E-7 : f32
    %6 = vector.broadcast %cst_2 : f32 to vector<16x1xf32>
    %7 = arith.addf %5, %6 : vector<16x1xf32>
    %8 = math.rsqrt %7 : vector<16x1xf32>
    %9 = vector.broadcast %8 : vector<16x1xf32> to vector<16x32xf32>
    %10 = arith.mulf %0, %9 : vector<16x32xf32>
    %c0_3 = arith.constant 0 : index
    %c0_4 = arith.constant 0 : index
    %11 = vector.load %arg3[%c0_3, %c0_4] : memref<1x32xf32, #tpu.memory_space<vmem>>, vector<1x32xf32>
    %12 = vector.broadcast %11 : vector<1x32xf32> to vector<16x32xf32>
    %13 = arith.mulf %10, %12 : vector<16x32xf32>
    %14 = arith.truncf %13 : vector<16x32xf32> to vector<16x32xbf16>
    %c0_5 = arith.constant 0 : index
    %c0_6 = arith.constant 0 : index
    %15 = vector.load %arg4[%c0_5, %c0_6] : memref<32x96xbf16, #tpu.memory_space<vmem>>, vector<32x96xbf16>
    %cst_7 = arith.constant dense<0.000000e+00> : vector<16x96xf32>
    %16 = tpu.matmul %14, %15, %cst_7 {dimension_numbers = #tpu.dot_dimension_numbers<[1], [0], [0], [1], [0, 0, 1, 1], [], []>} : vector<16x32xbf16>, vector<32x96xbf16>, vector<16x96xf32> -> vector<16x96xf32>
    %17 = arith.truncf %16 : vector<16x96xf32> to vector<16x96xbf16>
    %c0_8 = arith.constant 0 : index
    %c0_9 = arith.constant 0 : index
    %18 = vector.load %arg5[%c0_8, %c0_9] : memref<16x96xbf16, #tpu.memory_space<vmem>>, vector<16x96xbf16>
    tpu.vector_store %arg5[%c0_8, %c0_9], %17 {strides = array<i32>} : memref<16x96xbf16, #tpu.memory_space<vmem>>, vector<16x96xbf16>,
    return
  }
  func.func @transform_0(%arg0: i32, %arg1: i32) -> (i32, i32) {
    %c0_i32 = arith.constant 0 : i32
    %c0_i32_0 = arith.constant 0 : i32
    return %arg0, %c0_i32 : i32, i32
  }
  func.func @transform_1(%arg0: i32, %arg1: i32) -> (i32, i32) {
    %c0_i32 = arith.constant 0 : i32
    %c0_i32_0 = arith.constant 0 : i32
    %c0_i32_1 = arith.constant 0 : i32
    return %c0_i32, %c0_i32_0 : i32, i32
  }
  func.func @transform_2(%arg0: i32, %arg1: i32) -> (i32, i32) {
    %c0_i32 = arith.constant 0 : i32
    %c0_i32_0 = arith.constant 0 : i32
    return %c0_i32, %arg1 : i32, i32
  }
  func.func @transform_3(%arg0: i32, %arg1: i32) -> (i32, i32) {
    %c0_i32 = arith.constant 0 : i32
    return %arg0, %arg1 : i32, i32
  }
}

</mosaic_0001>

<bundles_post_ra>
// kernel: tpu_custom_call.1
= control target key start
LH: loop header
LB: loop body
LE: loop exit
PB: predicated region body
PF: predicated region fallthrough
CT: control target
= control target key end

     0   :  { %8 = vsyncpa [#allocation3], 0  ;;  %s313_s0 = inlined_call_operand.hbm [shape: f32[16,32], index: 0, kind: input, shape index: {}]   ;;  %s314_s1 = inlined_call_operand.vmem [shape: f32[1,32], index: 1, kind: input, shape index: {}]   ;;  %s315_s2 = inlined_call_operand.hbm [shape: bf16[32,96], index: 2, kind: input, shape index: {}]   ;;  %s316_s3 = inlined_call_operand.hbm [shape: bf16[16,96], index: 3, kind: output, shape index: {}]  }
   0x1   :  { %9 = vsyncpa [#allocation6], 0 }
   0x2   :  { %10 = vsyncpa [#allocation4], 0  ;;  %s263_s12 = smov [#allocation2]  }
   0x3   :  { %s16_s13 = sshll.u32 %s263_s12, 4  ;;  %s17_s13 = int_to_ptr.vmem [resolvable:$true] %s16_s13 }
   0x4   :  { %s205_s14 = scalar_lea.vmem %s17_s13, 256  ;;  %p210_p1 = scmp.lt.s32.totalorder %s17_s13, %s17_s13 }
   0x5   :  { %p206_p0 = scmp.ne.s32.totalorder %s17_s13, %s205_s14  ;;  %p211_p2 = scmp.lt.s32.totalorder %s205_s14, %s205_s14 }
   0x7   :  { %p212_p3 = por %p211_p2, %p210_p1 }
   0x9   :  { %p213_p4 = pnand %p212_p3, %p206_p0 }
   0xb   :  { %216 = shalt.err (!%p213_p4)
}
   0xc   :  { %s264_s15 = smov 128   ;;  %s265_s16 = smov 8  }
   0xd   :  { %22 = dma.hbm_to_vmem [thread:$0]  %s313_s0, 256, %s17_s13, [#allocation3], %s264_s15, %s264_s15, %s265_s16  }
   0xe   :  { %s266_s19 = smov [#allocation5]  }
   0xf   :  { %s30_s20 = sshll.u32 %s266_s19, 4  ;;  %s31_s20 = int_to_ptr.vmem [resolvable:$true] %s30_s20 }
  0x10   :  { %s225_s21 = scalar_lea.vmem %s31_s20, 256  ;;  %p230_p6 = scmp.lt.s32.totalorder %s31_s20, %s31_s20 }
  0x11   :  { %p226_p5 = scmp.ne.s32.totalorder %s31_s20, %s225_s21  ;;  %p231_p7 = scmp.lt.s32.totalorder %s225_s21, %s225_s21 }
  0x13   :  { %p232_p8 = por %p231_p7, %p230_p6 }
  0x15   :  { %p233_p9 = pnand %p232_p8, %p226_p5 }
  0x17   :  { %236 = shalt.err (!%p233_p9)
}
  0x18   :  { %s267_s22 = smov 64   ;;  %s268_s23 = smov 4  }
  0x19   :  { %36 = dma.hbm_to_vmem [thread:$0]  %s315_s2, 256, %s31_s20, [#allocation6], %s267_s22, %s267_s22, %s268_s23  }
  0x1a   :  { %257 = dma.done.wait [#allocation3], 256  }
  0x1b   :  { %258 = vsyncadd [#allocation3], 4294967040 }
  0x1c   :  { %259 = dma.done.wait [#allocation6], 256  }
  0x1d   :  { %260 = vsyncadd [#allocation6], 4294967040  ;;  %v44_v0 = vld [vmem:[#allocation2] sm:$0xff]  ;;  %vm48_vm0 = vcmask 261120   ;;  %v45_v1 = vld [vmem:[#allocation2 + $0x8] sm:$0xff]  ;;  %v269_v7 = vmov 0.0  }
  0x1e   :  { %v46_v2 = vmul.f32 %v44_v0, %v44_v0  ;;  %v47_v3 = vmul.f32 %v45_v1, %v45_v1  ;;  %v191_v6 = vld [vmem:[#allocation5 + $0x8] sm:$0xff]   ;;  %174 = vmatprep.subr.bf16.mxu0 %v269_v7  ;;  %vm270_vm1 = vmmov 0   ;;  %v192_v8 = vld [vmem:[#allocation5] sm:$0xff]   ;;  %v163_v18 = vld [vmem:[%s314_s1] ss:$0 sm:$0xff]  ;;  %vm142_vm2 = vcmask 781312  }
  0x1f   :  { %178 = vmatprep.mubr.msk.bf16.mxu0 %vm270_vm1, %v269_v7  ;;  %175 = vmatpush3.bf16.msra.mxu0 %v191_v6  ;;  %s271_s26 = smov [#allocation7]  }
  0x20   :  { %v49_v4 = vsel %vm48_vm0, %v46_v2, 0.0  ;;  %v52_v5 = vsel %vm48_vm0, %v47_v3, 0.0  ;;  %176 = vmatprep.subr.bf16.mxu0 %v269_v7  ;;  %s150_s27 = sshll.u32 %s271_s26, 4  ;;  %s151_s27 = int_to_ptr.vmem [resolvable:$true] %s150_s27 }
  0x21   :  { %50 = vadd.xlane.f32.xlu0 %v49_v4  ;;  %s237_s28 = scalar_lea.vmem %s151_s27, 128  ;;  %p242_p11 = scmp.lt.s32.totalorder %s151_s27, %s151_s27 }
  0x22   :  { %p238_p10 = scmp.ne.s32.totalorder %s151_s27, %s237_s28  ;;  %p243_p12 = scmp.lt.s32.totalorder %s237_s28, %s237_s28 }
  0x23   :  { %177 = vmatpush3.bf16.msra.mxu0 %v192_v8 }
  0x24   :  { %p244_p13 = por %p243_p12, %p242_p11 }
  0x25   :  { %53 = vadd.xlane.f32.xlu0 %v52_v5 }
  0x26   :  { %p245_p0 = pnand %p244_p13, %p238_p10 }
  0xaa   :  { %v51_v9 = vpop.xlane.xlu0 %50 }
  0xab   :  { %v56_v10 = vmul.f32 0.03125, %v51_v9 }
  0xad   :  { %v58_v11 = vadd.f32 1e-06, %v56_v10 }
  0xae   :  { %v54_v12 = vpop.xlane.xlu0 %53 }
  0xaf   :  { %193 = vrsqrt.f32 %v58_v11  ;;  %v57_v13 = vmul.f32 0.03125, %v54_v12 }
  0xb1   :  { %v59_v14 = vadd.f32 1e-06, %v57_v13 }
  0xb3   :  { %195 = vrsqrt.f32 %v59_v14 }
  0xbc   :  { %v194_v15 = vpop.eup %193 }
  0xbd   :  { %v62_v16 = vmul.f32 %v194_v15, %v44_v0 }
  0xbf   :  { %v71_v20 = vmul.f32 %v163_v18, %v62_v16 }
  0xc0   :  { %v196_v17 = vpop.eup %195 }
  0xc1   :  { %v63_v19 = vmul.f32 %v196_v17, %v45_v1 }
  0xc3   :  { %v72_v21 = vmul.f32 %v163_v18, %v63_v19 }
  0xc5   :  { %v73_v22 = vpack.c.bf16 %v72_v21, %v71_v20 }
  0xc7   :  { %179 = vmatmul.mubr.msk.bf16.vlgmr.msra.gmra.mxu0 %vm48_vm0, %v73_v22 }
 0x187   :  { %v127_v23 = vpop.f32.mrf.mxu0 }
 0x188   :  { %v169_v24 = vpack.c.bf16 %v127_v23, %v127_v23 }
 0x189   :  { %v180_v25 = vpop.f32.mrf.mxu0 }
 0x18a   :  { %143 = vst.msk [vmem:[#allocation7] sm:$0xf] %vm142_vm2, %v169_v24 }
 0x18b   :  { %v130_v26 = vpop.f32.mrf.mxu0 }
 0x18c   :  { %v170_v27 = vpack.c.bf16 %v130_v26, %v130_v26 }
 0x18d   :  { %v181_v28 = vpop.f32.mrf.mxu0 }
 0x18e   :  { %144 = vst.msk [vmem:[#allocation7 + $0x4] sm:$0xf] %vm142_vm2, %v170_v27 }
 0x18f   :  { %248 = shalt.err (!%p245_p0)
}
 0x190   :  { %156 = dma.vmem_to_hbm [thread:$0]  %s151_s27, 128, %s316_s3, [#allocation4], %s267_s22, %s267_s22, %s268_s23  }
 0x191   :  { %261 = dma.done.wait [#allocation4], 128  }
 0x192   :  { %262 = vsyncadd [#allocation4], 4294967168 }
 0x193   :  { %160 = vsyncpa [#allocation3], 1 }
 0x194   :  { %161 = vsyncpa [#allocation6], 1 }
 0x195   :  { %162 = vsyncpa [#allocation4], 1 }

</bundles_post_ra>
